<compile_context>
chip_gen: v6e
topology: v6e:2x2x1
jax: 0.10.0
libtpu: 0.0.40
codegen_flags: <defaults>
</compile_context>

<pallas_src>
import functools
from typing import NamedTuple, Optional

import jax
import jax.numpy as jnp
from jax.experimental import pallas as pl
from jax.experimental.pallas import tpu as pltpu


class SparseMat(NamedTuple):
    """JAX analog of the SparseMat container used by the PyTorch module."""
    values: jax.Array        # (N, d_in or d_out)
    indices: jax.Array       # (2, N)
    cam_per_pts: jax.Array   # (n_pts,)
    pts_per_cam: jax.Array   # (n_cams,)
    shape: tuple             # (n_cams, n_pts, feature_dim)


def _cdiv(a, b):
    return -(-a // b)


def _round_up(x, m):
    return ((x + m - 1) // m) * m


def _embed_kernel(x_ref, o_ref, *, multires, reseed=3):
    """Lane-dense positional-encoding body.

    x_ref: (block_rows, 128) slab of input scalars in VMEM.
    o_ref: (1 + 2*multires, block_rows, 128) output slabs, one full-width
           channel per frequency component.
    Channel order: [x, sin(2^0 x), cos(2^0 x), sin(2^1 x), cos(2^1 x), ...]
    """
    # Identity channel straight from the input ref (no f32 round trip when the
    # dtypes match) -> full-width unmasked store.
    o_ref[0] = x_ref[...].astype(o_ref.dtype)

    x = x_ref[...].astype(jnp.float32)
    s = c = None
    for k in range(multires):
        if k % reseed == 0:
            # Exact EUP sin/cos re-seed every `reseed` octaves (2^k multiply is
            # exact in f32) -> bounds the double-angle error drift.
            xk = x if k == 0 else x * jnp.float32(2.0 ** k)
            s = jnp.sin(xk)
            c = jnp.cos(xk)
        else:
            # Power-of-two frequencies via the double-angle recurrence (VPU).
            s, c = 2.0 * s * c, 2.0 * c * c - 1.0
        o_ref[2 * k + 1] = s.astype(o_ref.dtype)
        o_ref[2 * k + 2] = c.astype(o_ref.dtype)


def pallas_positional_embed(values, multires, *,
                            block_rows=2048,
                            out_dtype=None,
                            channel_major=False,
                            vmem_block_budget_bytes=24 * (1 << 20)):
    """NeRF-style positional encoding of `values` with shape (N, in_dim).

    Returns (embedded, d_out).
      channel_major=False: embedded is (N, in_dim*(1+2*multires)), ordered
        exactly like torch get_embedder (include_input=True, log_sampling=True).
      channel_major=True: embedded is the kernel's native lane-dense
        (n_ch, N, in_dim) layout (no final permutation) — preferred when the
        downstream consumer can absorb the channel ordering.
    """
    n, in_dim = values.shape
    if multires <= 0:
        # Matches torch.nn.Identity(): no work, no kernel needed.
        return values, in_dim

    n_ch = 1 + 2 * multires
    d_out = in_dim * n_ch
    in_dtype = values.dtype
    out_dtype = in_dtype if out_dtype is None else jnp.dtype(out_dtype)
    lanes = 128
    in_item = jnp.dtype(in_dtype).itemsize
    out_item = jnp.dtype(out_dtype).itemsize
    # Minimum sublane tile per dtype: 8 (f32), 16 (bf16/f16), 32 (int8/fp8).
    sub_min = max(32 // in_item, 32 // out_item, 8)

    total = n * in_dim
    rows_needed = _cdiv(total, lanes)

    # VMEM-gated block-size cap: double-buffered (input + n_ch output) rows.
    bytes_per_block_row = 2 * lanes * (in_item + n_ch * out_item)
    cap = max(sub_min,
              (vmem_block_budget_bytes // bytes_per_block_row)
              // sub_min * sub_min)
    target = max(sub_min, min(block_rows, cap))

    # Choose number of grid steps: >=2 (even) for mid/large inputs so both v7x
    # TensorCores get work; block size adapted so padding stays at a few %.
    if rows_needed <= 2 * sub_min:
        num_blocks = 1
    else:
        num_blocks = max(2, _cdiv(rows_needed, target))
        if num_blocks % 2:
            num_blocks += 1
    blk = _round_up(_cdiv(rows_needed, num_blocks), sub_min)
    rows = num_blocks * blk
    padded = rows * lanes

    # Flatten to a lane-dense slab; pad only the small ragged tail.
    flat = jnp.reshape(values, (total,))
    if padded != total:
        flat = jnp.pad(flat, (0, padded - total))
    slab = jnp.reshape(flat, (rows, lanes))

    vmem_needed = 2 * blk * lanes * (in_item + n_ch * out_item)
    vmem_limit = int(min(vmem_needed + (8 << 20), 40 << 20))

    n_transcendental = 2 * _cdiv(multires, 3)
    cost = pl.CostEstimate(
        flops=int(6 * multires * rows * lanes),
        transcendentals=int(n_transcendental * rows * lanes),
        bytes_accessed=int(rows * lanes * (in_item + n_ch * out_item)))

    out = pl.pallas_call(
        functools.partial(_embed_kernel, multires=multires),
        out_shape=jax.ShapeDtypeStruct((n_ch, rows, lanes), out_dtype),
        grid_spec=pltpu.PrefetchScalarGridSpec(
            num_scalar_prefetch=0,
            grid=(num_blocks,),
            in_specs=[pl.BlockSpec((blk, lanes), lambda i: (i, 0))],
            out_specs=pl.BlockSpec((n_ch, blk, lanes), lambda i: (0, i, 0)),
        ),
        compiler_params=pltpu.CompilerParams(
            dimension_semantics=("parallel",),
            vmem_limit_bytes=vmem_limit),
        cost_estimate=cost,
    )(slab)

    # (n_ch, rows*lanes) -> drop pad -> (n_ch, N, in_dim)
    out = jnp.reshape(out, (n_ch, padded))[:, :total]
    out = jnp.reshape(out, (n_ch, n, in_dim))
    if channel_major:
        # Lane-dense native layout: no permutation, no extra HBM round-trip.
        return out, d_out
    # TODO(synk): this final permute is pure XLA layout plumbing (~2x the
    # kernel's own HBM traffic); prefer channel_major=True and consume the
    # (n_ch, N, in_dim) layout directly in the downstream MLP.
    out = jnp.transpose(out, (1, 0, 2)).reshape(n, d_out)
    return out, d_out


class EmbeddingLayer:
    """JAX/Pallas port of the PyTorch EmbeddingLayer."""

    def __init__(self, multires, in_dim, *, out_dtype: Optional[jnp.dtype] = None):
        self.multires = multires
        self.in_dim = in_dim
        self.out_dtype = out_dtype
        self.d_out = in_dim * (1 + 2 * multires) if multires > 0 else in_dim

    def __call__(self, x: SparseMat) -> SparseMat:
        embedded, d_out = pallas_positional_embed(
            x.values, self.multires, out_dtype=self.out_dtype)
        new_shape = (x.shape[0], x.shape[1], d_out)
        return SparseMat(embedded, x.indices, x.cam_per_pts, x.pts_per_cam,
                         new_shape)


def _reference_embed(values, multires):
    if multires <= 0:
        return values
    outs = [values]
    for i in range(multires):
        f = 2.0 ** i
        outs.append(jnp.sin(values * f))
        outs.append(jnp.cos(values * f))
    return jnp.concatenate(outs, axis=-1)


if __name__ == "__main__":
    key = jax.random.PRNGKey(0)
    k_vals, k_idx, k_vals2, k_vals3 = jax.random.split(key, 4)

    # Synthetic sparse structure: n_cams cameras, n_pts points, N observations.
    n_cams, n_pts, in_dim = 4, 32, 3
    N = 128           # number of non-zero entries (observations)
    multires = 4      # -> d_out = 3 * (1 + 2*4) = 27

    values = jax.random.normal(k_vals, (N, in_dim), dtype=jnp.float32)
    indices = jax.random.randint(k_idx, (2, N), 0, n_pts, dtype=jnp.int32)
    cam_per_pts = jnp.full((n_pts,), n_cams, dtype=jnp.int32)
    pts_per_cam = jnp.full((n_cams,), n_pts, dtype=jnp.int32)
    x = SparseMat(values, indices, cam_per_pts, pts_per_cam,
                  (n_cams, n_pts, in_dim))

    layer = EmbeddingLayer(multires=multires, in_dim=in_dim)
    out = layer(x)
    jax.block_until_ready(out.values)

    ref = _reference_embed(values, multires)
    assert out.values.shape == (N, layer.d_out)
    assert out.shape == (n_cams, n_pts, layer.d_out)
    assert jnp.allclose(out.values, ref, atol=1e-4, rtol=1e-5)

    # Ragged N (padding path) + standard NeRF multires=10 (re-seed accuracy).
    N2, multires2 = 100, 10
    values2 = jax.random.normal(k_vals2, (N2, in_dim), dtype=jnp.float32)
    emb2, d_out2 = pallas_positional_embed(values2, multires2)
    jax.block_until_ready(emb2)
    ref2 = _reference_embed(values2, multires2)
    assert emb2.shape == (N2, in_dim * (1 + 2 * multires2)) and d_out2 == emb2.shape[1]
    assert jnp.allclose(emb2, ref2, atol=1e-4, rtol=1e-5)

    # Channel-major fast path is a pure re-layout of the standard output.
    emb2_cm, _ = pallas_positional_embed(values2, multires2, channel_major=True)
    jax.block_until_ready(emb2_cm)
    n_ch2 = 1 + 2 * multires2
    assert emb2_cm.shape == (n_ch2, N2, in_dim)
    assert jnp.allclose(
        jnp.transpose(emb2_cm, (1, 0, 2)).reshape(N2, d_out2), emb2,
        atol=0.0, rtol=0.0)

    # bf16 path (exercises the 16-row minimum sublane tile).
    values3 = jax.random.normal(k_vals3, (64, in_dim), dtype=jnp.bfloat16)
    emb3, d_out3 = pallas_positional_embed(values3, 3)
    jax.block_until_ready(emb3)
    ref3 = _reference_embed(values3.astype(jnp.float32), 3)
    assert emb3.dtype == jnp.bfloat16 and emb3.shape == (64, d_out3)
    assert jnp.allclose(emb3.astype(jnp.float32), ref3, atol=2e-2, rtol=2e-2)

    # multires == 0 -> Identity behavior.
    layer0 = EmbeddingLayer(multires=0, in_dim=in_dim)
    out0 = layer0(x)
    assert out0.values.shape == (N, in_dim) and out0.shape == (n_cams, n_pts, in_dim)
    assert jnp.array_equal(out0.values, values)

    print("KERNEL_OK")
</pallas_src>

<mosaic_0001>
module attributes {stable_mosaic.version = 11 : i64} {
  func.func @_embed_kernel(%arg0: i32, %arg1: memref<8x128xf32, #tpu.memory_space<vmem>>, %arg2: memref<9x8x128xf32, #tpu.memory_space<vmem>>) attributes {dimension_semantics = [#tpu.dimension_semantics<parallel>], iteration_bounds = array<i64: 1>, scalar_prefetch = 0 : i64, scratch_operands = 0 : i64, tpu.core_type = #tpu.core_type<tc>, window_params = [{transform_indices = @transform_0, window_bounds = array<i64: 8, 128>}, {transform_indices = @transform_1, window_bounds = array<i64: 9, 8, 128>}]} {
    %c0 = arith.constant 0 : index
    %c0_0 = arith.constant 0 : index
    %0 = vector.load %arg1[%c0, %c0_0] : memref<8x128xf32, #tpu.memory_space<vmem>>, vector<8x128xf32>
    %c0_1 = arith.constant 0 : index
    %c0_2 = arith.constant 0 : index
    %c0_3 = arith.constant 0 : index
    %1 = vector.load %arg2[%c0_1, %c0_2, %c0_3] : memref<9x8x128xf32, #tpu.memory_space<vmem>>, vector<1x8x128xf32>
    %2 = vector.shape_cast %1 : vector<1x8x128xf32> to vector<8x128xf32>
    %3 = vector.shape_cast %0 : vector<8x128xf32> to vector<1x8x128xf32>
    tpu.vector_store %arg2[%c0_1, %c0_2, %c0_3], %3 {strides = array<i32>} : memref<9x8x128xf32, #tpu.memory_space<vmem>>, vector<1x8x128xf32>,
    %c0_4 = arith.constant 0 : index
    %c0_5 = arith.constant 0 : index
    %4 = vector.load %arg1[%c0_4, %c0_5] : memref<8x128xf32, #tpu.memory_space<vmem>>, vector<8x128xf32>
    %5 = math.sin %4 : vector<8x128xf32>
    %6 = math.cos %4 : vector<8x128xf32>
    %c1 = arith.constant 1 : index
    %c0_6 = arith.constant 0 : index
    %c0_7 = arith.constant 0 : index
    %7 = vector.load %arg2[%c1, %c0_6, %c0_7] : memref<9x8x128xf32, #tpu.memory_space<vmem>>, vector<1x8x128xf32>
    %8 = vector.shape_cast %7 : vector<1x8x128xf32> to vector<8x128xf32>
    %9 = vector.shape_cast %5 : vector<8x128xf32> to vector<1x8x128xf32>
    tpu.vector_store %arg2[%c1, %c0_6, %c0_7], %9 {strides = array<i32>} : memref<9x8x128xf32, #tpu.memory_space<vmem>>, vector<1x8x128xf32>,
    %c2 = arith.constant 2 : index
    %c0_8 = arith.constant 0 : index
    %c0_9 = arith.constant 0 : index
    %10 = vector.load %arg2[%c2, %c0_8, %c0_9] : memref<9x8x128xf32, #tpu.memory_space<vmem>>, vector<1x8x128xf32>
    %11 = vector.shape_cast %10 : vector<1x8x128xf32> to vector<8x128xf32>
    %12 = vector.shape_cast %6 : vector<8x128xf32> to vector<1x8x128xf32>
    tpu.vector_store %arg2[%c2, %c0_8, %c0_9], %12 {strides = array<i32>} : memref<9x8x128xf32, #tpu.memory_space<vmem>>, vector<1x8x128xf32>,
    %cst = arith.constant 2.000000e+00 : f32
    %13 = vector.broadcast %cst : f32 to vector<8x128xf32>
    %14 = arith.mulf %13, %5 : vector<8x128xf32>
    %15 = arith.mulf %14, %6 : vector<8x128xf32>
    %cst_10 = arith.constant 2.000000e+00 : f32
    %16 = vector.broadcast %cst_10 : f32 to vector<8x128xf32>
    %17 = arith.mulf %16, %6 : vector<8x128xf32>
    %18 = arith.mulf %17, %6 : vector<8x128xf32>
    %cst_11 = arith.constant 1.000000e+00 : f32
    %19 = vector.broadcast %cst_11 : f32 to vector<8x128xf32>
    %20 = arith.subf %18, %19 : vector<8x128xf32>
    %c3 = arith.constant 3 : index
    %c0_12 = arith.constant 0 : index
    %c0_13 = arith.constant 0 : index
    %21 = vector.load %arg2[%c3, %c0_12, %c0_13] : memref<9x8x128xf32, #tpu.memory_space<vmem>>, vector<1x8x128xf32>
    %22 = vector.shape_cast %21 : vector<1x8x128xf32> to vector<8x128xf32>
    %23 = vector.shape_cast %15 : vector<8x128xf32> to vector<1x8x128xf32>
    tpu.vector_store %arg2[%c3, %c0_12, %c0_13], %23 {strides = array<i32>} : memref<9x8x128xf32, #tpu.memory_space<vmem>>, vector<1x8x128xf32>,
    %c4 = arith.constant 4 : index
    %c0_14 = arith.constant 0 : index
    %c0_15 = arith.constant 0 : index
    %24 = vector.load %arg2[%c4, %c0_14, %c0_15] : memref<9x8x128xf32, #tpu.memory_space<vmem>>, vector<1x8x128xf32>
    %25 = vector.shape_cast %24 : vector<1x8x128xf32> to vector<8x128xf32>
    %26 = vector.shape_cast %20 : vector<8x128xf32> to vector<1x8x128xf32>
    tpu.vector_store %arg2[%c4, %c0_14, %c0_15], %26 {strides = array<i32>} : memref<9x8x128xf32, #tpu.memory_space<vmem>>, vector<1x8x128xf32>,
    %cst_16 = arith.constant 2.000000e+00 : f32
    %27 = vector.broadcast %cst_16 : f32 to vector<8x128xf32>
    %28 = arith.mulf %27, %15 : vector<8x128xf32>
    %29 = arith.mulf %28, %20 : vector<8x128xf32>
    %cst_17 = arith.constant 2.000000e+00 : f32
    %30 = vector.broadcast %cst_17 : f32 to vector<8x128xf32>
    %31 = arith.mulf %30, %20 : vector<8x128xf32>
    %32 = arith.mulf %31, %20 : vector<8x128xf32>
    %cst_18 = arith.constant 1.000000e+00 : f32
    %33 = vector.broadcast %cst_18 : f32 to vector<8x128xf32>
    %34 = arith.subf %32, %33 : vector<8x128xf32>
    %c5 = arith.constant 5 : index
    %c0_19 = arith.constant 0 : index
    %c0_20 = arith.constant 0 : index
    %35 = vector.load %arg2[%c5, %c0_19, %c0_20] : memref<9x8x128xf32, #tpu.memory_space<vmem>>, vector<1x8x128xf32>
    %36 = vector.shape_cast %35 : vector<1x8x128xf32> to vector<8x128xf32>
    %37 = vector.shape_cast %29 : vector<8x128xf32> to vector<1x8x128xf32>
    tpu.vector_store %arg2[%c5, %c0_19, %c0_20], %37 {strides = array<i32>} : memref<9x8x128xf32, #tpu.memory_space<vmem>>, vector<1x8x128xf32>,
    %c6 = arith.constant 6 : index
    %c0_21 = arith.constant 0 : index
    %c0_22 = arith.constant 0 : index
    %38 = vector.load %arg2[%c6, %c0_21, %c0_22] : memref<9x8x128xf32, #tpu.memory_space<vmem>>, vector<1x8x128xf32>
    %39 = vector.shape_cast %38 : vector<1x8x128xf32> to vector<8x128xf32>
    %40 = vector.shape_cast %34 : vector<8x128xf32> to vector<1x8x128xf32>
    tpu.vector_store %arg2[%c6, %c0_21, %c0_22], %40 {strides = array<i32>} : memref<9x8x128xf32, #tpu.memory_space<vmem>>, vector<1x8x128xf32>,
    %cst_23 = arith.constant 8.000000e+00 : f32
    %41 = vector.broadcast %cst_23 : f32 to vector<8x128xf32>
    %42 = arith.mulf %4, %41 : vector<8x128xf32>
    %43 = math.sin %42 : vector<8x128xf32>
    %44 = math.cos %42 : vector<8x128xf32>
    %c7 = arith.constant 7 : index
    %c0_24 = arith.constant 0 : index
    %c0_25 = arith.constant 0 : index
    %45 = vector.load %arg2[%c7, %c0_24, %c0_25] : memref<9x8x128xf32, #tpu.memory_space<vmem>>, vector<1x8x128xf32>
    %46 = vector.shape_cast %45 : vector<1x8x128xf32> to vector<8x128xf32>
    %47 = vector.shape_cast %43 : vector<8x128xf32> to vector<1x8x128xf32>
    tpu.vector_store %arg2[%c7, %c0_24, %c0_25], %47 {strides = array<i32>} : memref<9x8x128xf32, #tpu.memory_space<vmem>>, vector<1x8x128xf32>,
    %c8 = arith.constant 8 : index
    %c0_26 = arith.constant 0 : index
    %c0_27 = arith.constant 0 : index
    %48 = vector.load %arg2[%c8, %c0_26, %c0_27] : memref<9x8x128xf32, #tpu.memory_space<vmem>>, vector<1x8x128xf32>
    %49 = vector.shape_cast %48 : vector<1x8x128xf32> to vector<8x128xf32>
    %50 = vector.shape_cast %44 : vector<8x128xf32> to vector<1x8x128xf32>
    tpu.vector_store %arg2[%c8, %c0_26, %c0_27], %50 {strides = array<i32>} : memref<9x8x128xf32, #tpu.memory_space<vmem>>, vector<1x8x128xf32>,
    return
  }
  func.func @transform_0(%arg0: i32) -> (i32, i32) {
    %c0_i32 = arith.constant 0 : i32
    %c0_i32_0 = arith.constant 0 : i32
    return %arg0, %c0_i32 : i32, i32
  }
  func.func @transform_1(%arg0: i32) -> (i32, i32, i32) {
    %c0_i32 = arith.constant 0 : i32
    %c0_i32_0 = arith.constant 0 : i32
    %c0_i32_1 = arith.constant 0 : i32
    return %c0_i32, %arg0, %c0_i32_0 : i32, i32, i32
  }
}

</mosaic_0001>

<bundles_post_ra>
// kernel: tpu_custom_call.1
= control target key start
LH: loop header
LB: loop body
LE: loop exit
PB: predicated region body
PF: predicated region fallthrough
CT: control target
= control target key end

     0   :  { %6 = vsyncpa [#allocation3], 0  ;;  %s668_s0 = inlined_call_operand.hbm [shape: f32[8,128], index: 0, kind: input, shape index: {}]   ;;  %s669_s1 = inlined_call_operand.hbm [shape: f32[9,8,128], index: 1, kind: output, shape index: {}]  }
   0x1   :  { %7 = vsyncpa [#allocation4], 0  ;;  %s570_s6 = smov [#allocation2]  }
   0x2   :  { %s14_s7 = sshll.u32 %s570_s6, 4  ;;  %s15_s7 = int_to_ptr.vmem [resolvable:$true] %s14_s7 }
   0x3   :  { %s534_s8 = scalar_lea.vmem %s15_s7, 128  ;;  %p539_p1 = scmp.lt.s32.totalorder %s15_s7, %s15_s7 }
   0x4   :  { %p535_p0 = scmp.ne.s32.totalorder %s15_s7, %s534_s8  ;;  %p540_p2 = scmp.lt.s32.totalorder %s534_s8, %s534_s8 }
   0x6   :  { %p541_p3 = por %p540_p2, %p539_p1 }
   0x8   :  { %p542_p4 = pnand %p541_p3, %p535_p0 }
   0xa   :  { %545 = shalt.err (!%p542_p4)
}
   0xb   :  { %17 = dma.hbm_to_vmem [thread:$0]  %s668_s0, 128, %s15_s7, [#allocation3]  }
   0xc   :  { %566 = dma.done.wait [#allocation3], 128  }
   0xd   :  { %567 = vsyncadd [#allocation3], 4294967168  ;;  %v593_v0 = vld [vmem:[#allocation2] sm:$0xff]  ;;  %v571_v21 = vmov 683565275   ;;  %s577_s0 = smov [#allocation5]  }
   0xe   :  { %22 = vst [vmem:[#allocation5] sm:$0xff] %v593_v0  ;;  %v24_v1 = vand.u32 2147483647, %v593_v0  ;;  %v27_v2 = vand.u32 2139095040, %v593_v0  ;;  %v599_v3 = vmul.f32 8.0, %v593_v0  ;;  %vm26_vm14 = vcmp.lt.s32.totalorder %v593_v0, 0 }
   0xf   :  { %v572_v23 = vmov 2475754826   ;;  %v573_v25 = vmov 2131351028   ;;  %v574_v27 = vmov 2102212464  }
  0x10   :  { %v28_v4 = vshrl.u32 %v27_v2, 23  ;;  %v31_v5 = vand.u32 8388607, %v24_v1  ;;  %v254_v6 = vand.u32 2147483647, %v599_v3  ;;  %v257_v7 = vand.u32 2139095040, %v599_v3 }
  0x11   :  { %v575_v29 = vmov 920167782   ;;  %v576_v36 = vmov 1326507024   ;;  %vm25_vm15 = vcmp.le.f32.partialorder %v24_v1, 0.7853982 }
  0x12   :  { %v482_v8 = vadd.s32 4294967169, %v28_v4  ;;  %v258_v9 = vshrl.u32 %v257_v7, 23  ;;  %v32_v11 = vor.u32 8388608, %v31_v5  ;;  %v607_v13 = vand.u32 8388607, %v254_v6  ;;  %s470_s11 = sshll.u32 %s577_s0, 4  ;;  %s471_s11 = int_to_ptr.vmem [resolvable:$true] %s470_s11 }
  0x13   :  { %s546_s12 = scalar_lea.vmem %s471_s11, 1152  ;;  %p551_p6 = scmp.lt.s32.totalorder %s471_s11, %s471_s11 }
  0x14   :  { %v34_v10 = vadd.s32 1, %v482_v8  ;;  %v492_v12 = vadd.s32 4294967169, %v258_v9  ;;  %v609_v18 = vshll.u32 %v32_v11, 8  ;;  %v262_v19 = vor.u32 8388608, %v607_v13  ;;  %p547_p5 = scmp.ne.s32.totalorder %s471_s11, %s546_s12  ;;  %p552_p7 = scmp.lt.s32.totalorder %s546_s12, %s546_s12 }
  0x16   :  { %vm35_vm0 = vcmp.gt.s32.totalorder %v34_v10, 0  ;;  %v264_v15 = vadd.s32 1, %v492_v12  ;;  %p553_p8 = por %p552_p7, %p551_p6 }
  0x17   :  { %v36_v14 = vsel %vm35_vm0, %v34_v10, 0  ;;  %vm256_vm0 = vcmp.lt.s32.totalorder %v599_v3, 0 }
  0x18   :  { %v37_v16 = vshrl.u32 %v36_v14, 5  ;;  %v38_v17 = vand.u32 31, %v36_v14  ;;  %vm265_vm1 = vcmp.gt.s32.totalorder %v264_v15, 0  ;;  %p554_p9 = pnand %p553_p8, %p547_p5 }
  0x19   :  { %v266_v41 = vsel %vm265_vm1, %v264_v15, 0  ;;  %vm255_vm1 = vcmp.le.f32.partialorder %v254_v6, 0.7853982 }
  0x1a   :  { %v39_v20 = vsub.s32 32, %v38_v17  ;;  %v41_v22 = vshll.u32 %v571_v21, %v38_v17  ;;  %v44_v24 = vshll.u32 %v572_v23, %v38_v17  ;;  %v47_v26 = vshll.u32 %v573_v25, %v38_v17 }
  0x1b   :  { %v50_v28 = vshll.u32 %v574_v27, %v38_v17  ;;  %v53_v30 = vshll.u32 %v575_v29, %v38_v17  ;;  %vm56_vm2 = vcmp.lt.s32.totalorder %v37_v16, 1  ;;  %vm57_vm3 = vcmp.lt.s32.totalorder %v37_v16, 2 }
  0x1c   :  { %v40_v31 = vshrl.u32 %v571_v21, %v39_v20  ;;  %v42_v32 = vshrl.u32 %v572_v23, %v39_v20  ;;  %v45_v33 = vshrl.u32 %v573_v25, %v39_v20  ;;  %v48_v34 = vshrl.u32 %v574_v27, %v39_v20 }
  0x1d   :  { %v51_v35 = vshrl.u32 %v575_v29, %v39_v20  ;;  %v54_v37 = vshrl.u32 %v576_v36, %v39_v20  ;;  %vm58_vm4 = vcmp.lt.s32.totalorder %v37_v16, 3  ;;  %vm59_vm5 = vcmp.lt.s32.totalorder %v37_v16, 4 }
  0x1e   :  { %v43_v38 = vor.u32 %v42_v32, %v41_v22  ;;  %v46_v39 = vor.u32 %v45_v33, %v44_v24  ;;  %v49_v40 = vor.u32 %v48_v34, %v47_v26  ;;  %v267_v44 = vshrl.u32 %v266_v41, 5 }
  0x1f   :  { %v52_v42 = vor.u32 %v51_v35, %v50_v28  ;;  %v55_v43 = vor.u32 %v54_v37, %v53_v30  ;;  %v268_v45 = vand.u32 31, %v266_v41 }
  0x20   :  { %v60_v46 = vsel %vm56_vm2, %v40_v31, %v43_v38  ;;  %v61_v47 = vsel %vm59_vm5, %v49_v40, 2102212464  ;;  %v64_v48 = vsel %vm56_vm2, %v43_v38, %v46_v39  ;;  %v68_v49 = vsel %vm56_vm2, %v46_v39, %v49_v40 }
  0x21   :  { %v62_v50 = vsel %vm58_vm4, %v46_v39, %v61_v47  ;;  %v65_v51 = vsel %vm59_vm5, %v52_v42, 920167782  ;;  %v69_v52 = vsel %vm59_vm5, %v55_v43, 1326507024  ;;  %v269_v53 = vsub.s32 32, %v268_v45 }
  0x22   :  { %v63_v54 = vsel %vm57_vm3, %v60_v46, %v62_v50  ;;  %v66_v55 = vsel %vm58_vm4, %v49_v40, %v65_v51  ;;  %v70_v56 = vsel %vm58_vm4, %v52_v42, %v69_v52  ;;  %v271_v57 = vshll.u32 %v571_v21, %v268_v45 }
  0x23   :  { %v67_v58 = vsel %vm57_vm3, %v64_v48, %v66_v55  ;;  %v71_v59 = vsel %vm57_vm3, %v68_v49, %v70_v56  ;;  %v79_v60 = vmul.u32 %v609_v18, %v63_v54  ;;  %v270_v61 = vshrl.u32 %v571_v21, %v269_v53 }
  0x24   :  { %v624_v62 = vmul.u32.u64.low %v609_v18, %v71_v59  ;;  %v625_v63 = vmul.u32.u64.high %v609_v18, %v71_v59, %v624_v62  ;;  %v628_v2 = vmul.u32.u64.low %v609_v18, %v67_v58  ;;  %v629_v4 = vmul.u32.u64.high %v609_v18, %v67_v58, %v628_v2 }
  0x25   :  { %v272_v5 = vshrl.u32 %v572_v23, %v269_v53  ;;  %v274_v7 = vshll.u32 %v572_v23, %v268_v45  ;;  %v275_v8 = vshrl.u32 %v573_v25, %v269_v53  ;;  %v277_v9 = vshll.u32 %v573_v25, %v268_v45 }
  0x26   :  { %v278_v10 = vshrl.u32 %v574_v27, %v269_v53  ;;  %v280_v11 = vshll.u32 %v574_v27, %v268_v45  ;;  %v281_v12 = vshrl.u32 %v575_v29, %v269_v53  ;;  %v283_v14 = vshll.u32 %v575_v29, %v268_v45 }
  0x27   :  { %v273_v15 = vor.u32 %v272_v5, %v271_v57  ;;  %v276_v16 = vor.u32 %v275_v8, %v274_v7  ;;  %v284_v17 = vshrl.u32 %v576_v36, %v269_v53  ;;  %vm286_vm6 = vcmp.lt.s32.totalorder %v267_v44, 1 }
  0x28   :  { %vm81_vm7 = vc.u32 %v625_v63, %v628_v2  ;;  %v82_v20 = vadd.s32 1, %v629_v4  ;;  %v279_v21 = vor.u32 %v278_v10, %v277_v9  ;;  %v302_v18 = vshll.u32 %v262_v19, 8 }
  0x29   :  { %v282_v22 = vor.u32 %v281_v12, %v280_v11  ;;  %v285_v23 = vor.u32 %v284_v17, %v283_v14  ;;  %vm287_vm8 = vcmp.lt.s32.totalorder %v267_v44, 2  ;;  %vm288_vm9 = vcmp.lt.s32.totalorder %v267_v44, 3 }
  0x2a   :  { %v83_v24 = vsel %vm81_vm7, %v82_v20, %v629_v4  ;;  %vm289_vm10 = vcmp.lt.s32.totalorder %v267_v44, 4  ;;  %v290_v25 = vsel %vm286_vm6, %v270_v61, %v273_v15  ;;  %v294_v26 = vsel %vm286_vm6, %v273_v15, %v276_v16 }
  0x2b   :  { %v84_v27 = vadd.s32 %v83_v24, %v79_v60  ;;  %v291_v28 = vsel %vm289_vm10, %v279_v21, 2102212464  ;;  %v295_v29 = vsel %vm289_vm10, %v282_v22, 920167782  ;;  %v298_v30 = vsel %vm286_vm6, %v276_v16, %v279_v21 }
  0x2c   :  { %v292_v31 = vsel %vm288_vm9, %v276_v16, %v291_v28  ;;  %v296_v32 = vsel %vm288_vm9, %v279_v21, %v295_v29  ;;  %v299_v13 = vsel %vm289_vm10, %v285_v23, 1326507024  ;;  %v80_v55 = vadd.s32 %v628_v2, %v625_v63 }
  0x2d   :  { %v85_v19 = vadd.s32 536870912, %v84_v27  ;;  %v297_v33 = vsel %vm287_vm8, %v294_v26, %v296_v32  ;;  %v300_v34 = vsel %vm288_vm9, %v282_v22, %v299_v13  ;;  %v293_v35 = vsel %vm287_vm8, %v290_v25, %v292_v31 }
  0x2e   :  { %v301_v36 = vsel %vm287_vm8, %v298_v30, %v300_v34  ;;  %v642_v37 = vmul.u32.u64.low %v302_v18, %v297_v33  ;;  %v643_v38 = vmul.u32.u64.high %v302_v18, %v297_v33, %v642_v37  ;;  %v309_v43 = vmul.u32 %v302_v18, %v293_v35 }
  0x2f   :  { %v86_v39 = vshrl.u32 %v85_v19, 30  ;;  %v645_v40 = vmul.u32.u64.low %v302_v18, %v301_v36  ;;  %v646_v41 = vmul.u32.u64.high %v302_v18, %v301_v36, %v645_v40  ;;  %vm116_vm8 = vweird.f32 %v593_v0 }
  0x30   :  { %v312_v45 = vadd.s32 1, %v643_v38 }
  0x31   :  { %v87_v42 = vshll.u32 %v86_v39, 30  ;;  %vm311_vm11 = vc.u32 %v646_v41, %v642_v37  ;;  %v310_v15 = vadd.s32 %v642_v37, %v646_v41  ;;  %v110_v18 = vsub.s32 4, %v86_v39 }
  0x32   :  { %v313_v47 = vsel %vm311_vm11, %v312_v45, %v643_v38 }
  0x33   :  { %v88_v46 = vsub.s32 %v84_v27, %v87_v42  ;;  %v314_v49 = vadd.s32 %v313_v47, %v309_v43  ;;  %v111_v28 = vsel %vm26_vm14, %v110_v18, %v86_v39 }
  0x34   :  { %v113_v32 = vsel %vm25_vm15, 0, %v111_v28 }
  0x35   :  { %v90_v48 = vsub.s32 0, %v88_v46  ;;  %v315_v50 = vadd.s32 536870912, %v314_v49  ;;  %v117_v13 = vadd.s32 3, %v113_v32  ;;  %v221_v35 = vand.u32 3, %v113_v32 }
  0x37   :  { %v483_v44 = vmin.u32 %v90_v48, %v88_v46  ;;  %v316_v52 = vshrl.u32 %v315_v50, 30  ;;  %v118_v34 = vand.u32 3, %v117_v13  ;;  %vm226_vm3 = vcmp.eq.s32.totalorder %v221_v35, 2 }
  0x38   :  { %vm223_vm5 = vcmp.eq.s32.totalorder %v221_v35, 0  ;;  %vm222_vm7 = vcmp.lt.s32.totalorder %v221_v35, 2 }
  0x39   :  { %v92_v51 = vclz %v483_v44  ;;  %v317_v54 = vshll.u32 %v316_v52, 30  ;;  %v340_v1 = vsub.s32 4, %v316_v52  ;;  %vm123_vm2 = vcmp.eq.s32.totalorder %v118_v34, 2 }
  0x3a   :  { %vm120_vm4 = vcmp.eq.s32.totalorder %v118_v34, 0  ;;  %vm119_vm6 = vcmp.lt.s32.totalorder %v118_v34, 2 }
  0x3b   :  { %v484_v53 = vadd.s32 4294967294, %v92_v51  ;;  %v318_v57 = vsub.s32 %v314_v49, %v317_v54  ;;  %v341_v37 = vsel %vm256_vm0, %v340_v1, %v316_v52 }
  0x3c   :  { %v343_v40 = vsel %vm255_vm1, 0, %v341_v37 }
  0x3d   :  { %vm485_vm12 = vcmp.lt.s32.totalorder %v484_v53, 0  ;;  %v320_v61 = vsub.s32 0, %v318_v57 }
  0x3e   :  { %v95_v56 = vsel %vm485_vm12, 0, %v484_v53 }
  0x3f   :  { %v96_v58 = vsub.s32 32, %v95_v56  ;;  %v97_v59 = vshll.u32 %v88_v46, %v95_v56  ;;  %v100_v60 = vsub.s32 4294967266, %v95_v56  ;;  %v493_v5 = vmin.u32 %v320_v61, %v318_v57 }
  0x40   :  { %v347_v46 = vadd.s32 3, %v343_v40 }
  0x41   :  { %v98_v62 = vshrl.u32 %v80_v55, %v96_v58  ;;  %v101_v4 = vadd.s32 127, %v100_v60  ;;  %v322_v9 = vclz %v493_v5  ;;  %v451_v55 = vand.u32 3, %v343_v40 }
  0x42   :  { %v348_v54 = vand.u32 3, %v347_v46 }
  0x43   :  { %v99_v7 = vor.u32 %v98_v62, %v97_v59  ;;  %v102_v8 = vshll.u32 %v101_v4, 23  ;;  %v494_v12 = vadd.s32 4294967294, %v322_v9  ;;  %vm456_vm10 = vcmp.eq.s32.totalorder %v451_v55, 2 }
  0x44   :  { %vm353_vm9 = vcmp.eq.s32.totalorder %v348_v54, 2  ;;  %vm350_vm11 = vcmp.eq.s32.totalorder %v348_v54, 0  ;;  %vm452_vm12 = vcmp.lt.s32.totalorder %v451_v55, 2 }
  0x45   :  { %v103_v10 = vor.u32 4788187, %v102_v8  ;;  %v106_v11 = vcvt.s32.f32 %v99_v7  ;;  %vm495_vm13 = vcmp.lt.s32.totalorder %v494_v12, 0 }
  0x46   :  { %v325_v2 = vsel %vm495_vm13, 0, %v494_v12  ;;  %vm453_vm13 = vcmp.eq.s32.totalorder %v451_v55, 0 }
  0x47   :  { %v104_v14 = vand.u32 2147483647, %v103_v10  ;;  %v326_v16 = vsub.s32 32, %v325_v2  ;;  %v327_v17 = vshll.u32 %v318_v57, %v325_v2  ;;  %v330_v20 = vsub.s32 4294967266, %v325_v2 }
  0x49   :  { %v107_v63 = vmul.f32 %v106_v11, %v104_v14  ;;  %v328_v22 = vshrl.u32 %v310_v15, %v326_v16  ;;  %v331_v23 = vadd.s32 127, %v330_v20 }
  0x4b   :  { %v108_v21 = vxor.u32 2147483648, %v107_v63  ;;  %v329_v26 = vor.u32 %v328_v22, %v327_v17  ;;  %v332_v27 = vshll.u32 %v331_v23, 23 }
  0x4d   :  { %v109_v24 = vsel %vm26_vm14, %v108_v21, %v107_v63  ;;  %v333_v29 = vor.u32 4788187, %v332_v27  ;;  %v336_v30 = vcvt.s32.f32 %v329_v26  ;;  %vm349_vm14 = vcmp.lt.s32.totalorder %v348_v54, 2 }
  0x4e   :  { %v112_v25 = vsel %vm25_vm15, %v593_v0, %v109_v24  ;;  %vm346_vm15 = vweird.f32 %v599_v3 }
  0x4f   :  { %518 = vcosq.f32 %v112_v25  ;;  %v334_v31 = vand.u32 2147483647, %v333_v29 }
  0x50   :  { %520 = vsinq.f32 %v112_v25 }
  0x51   :  { %v337_v19 = vmul.f32 %v336_v30, %v334_v31 }
  0x53   :  { %v338_v33 = vxor.u32 2147483648, %v337_v19 }
  0x55   :  { %v339_v36 = vsel %vm256_vm0, %v338_v33, %v337_v19 }
  0x56   :  { %v342_v38 = vsel %vm255_vm1, %v599_v3, %v339_v36 }
  0x57   :  { %522 = vcosq.f32 %v342_v38 }
  0x58   :  { %524 = vsinq.f32 %v342_v38 }
  0x5c   :  { %v519_v39 = vpop.eup %518 }
  0x5d   :  { %v521_v41 = vpop.eup %520  ;;  %v124_v42 = vxor.u32 2147483648, %v519_v39 }
  0x5e   :  { %v121_v43 = vxor.u32 2147483648, %v521_v41 }
  0x5f   :  { %v125_v6 = vsel %vm123_vm2, %v124_v42, %v521_v41  ;;  %v228_v45 = vsel %vm226_vm3, %v124_v42, %v521_v41 }
  0x60   :  { %v122_v47 = vsel %vm120_vm4, %v519_v39, %v121_v43  ;;  %v225_v48 = vsel %vm223_vm5, %v519_v39, %v121_v43 }
  0x61   :  { %v126_v49 = vsel %vm119_vm6, %v122_v47, %v125_v6  ;;  %v229_v44 = vsel %vm222_vm7, %v225_v48, %v228_v45 }
  0x62   :  { %v127_v50 = vsel %vm116_vm8, nan, %v126_v49  ;;  %v230_v51 = vsel %vm116_vm8, nan, %v229_v44 }
  0x63   :  { %232 = vst [vmem:[#allocation5 + $0x8] sm:$0xff] %v127_v50  ;;  %v235_v52 = vmul.f32 2.0, %v127_v50  ;;  %v237_v53 = vmul.f32 2.0, %v230_v51  ;;  %234 = vst [vmem:[#allocation5 + $0x10] sm:$0xff] %v230_v51 }
  0x64   :  { %v523_v58 = vpop.eup %522 }
  0x65   :  { %v238_v56 = vmul.f32 %v237_v53, %v230_v51  ;;  %v236_v57 = vmul.f32 %v235_v52, %v230_v51  ;;  %v525_v60 = vpop.eup %524  ;;  %v354_v61 = vxor.u32 2147483648, %v523_v58 }
  0x66   :  { %v351_v5 = vxor.u32 2147483648, %v525_v60 }
  0x67   :  { %v490_v59 = vadd.f32 -1.0, %v238_v56  ;;  %241 = vst [vmem:[#allocation5 + $0x18] sm:$0xff] %v236_v57  ;;  %v244_v0 = vmul.f32 2.0, %v236_v57  ;;  %v355_v7 = vsel %vm353_vm9, %v354_v61, %v525_v60  ;;  %v458_v8 = vsel %vm456_vm10, %v354_v61, %v525_v60 }
  0x68   :  { %v352_v10 = vsel %vm350_vm11, %v523_v58, %v351_v5  ;;  %v455_v11 = vsel %vm453_vm13, %v523_v58, %v351_v5 }
  0x69   :  { %243 = vst [vmem:[#allocation5 + $0x20] sm:$0xff] %v490_v59  ;;  %v245_v62 = vmul.f32 %v490_v59, %v244_v0  ;;  %v246_v4 = vmul.f32 2.0, %v490_v59  ;;  %v356_v12 = vsel %vm349_vm14, %v352_v10, %v355_v7  ;;  %v459_v14 = vsel %vm452_vm12, %v455_v11, %v458_v8 }
  0x6a   :  { %v357_v63 = vsel %vm346_vm15, nan, %v356_v12  ;;  %v460_v2 = vsel %vm346_vm15, nan, %v459_v14 }
  0x6b   :  { %250 = vst [vmem:[#allocation5 + $0x28] sm:$0xff] %v245_v62  ;;  %v247_v9 = vmul.f32 %v490_v59, %v246_v4  ;;  %462 = vst [vmem:[#allocation5 + $0x38] sm:$0xff] %v357_v63 }
  0x6c   :  { %464 = vst [vmem:[#allocation5 + $0x40] sm:$0xff] %v460_v2 }
  0x6d   :  { %v491_v15 = vadd.f32 -1.0, %v247_v9 }
  0x6f   :  { %252 = vst [vmem:[#allocation5 + $0x30] sm:$0xff] %v491_v15 }
  0x70   :  { %557 = shalt.err (!%p554_p9)
}
  0x71   :  { %s578_s13 = smov 128   ;;  %s579_s14 = smov 8  }
  0x72   :  { %476 = dma.vmem_to_hbm [thread:$0]  %s471_s11, 1152, %s669_s1, [#allocation4], %s578_s13, %s578_s13, %s579_s14  }
  0x73   :  { %568 = dma.done.wait [#allocation4], 1152  }
  0x74   :  { %569 = vsyncadd [#allocation4], 4294966144 }
  0x75   :  { %480 = vsyncpa [#allocation3], 1 }
  0x76   :  { %481 = vsyncpa [#allocation4], 1 }

</bundles_post_ra>
